<compile_context>
chip_gen: v5e
topology: v5e:2x2
jax: 0.10.0
libtpu: 0.0.40
codegen_flags: <defaults>
</compile_context>

<pallas_src>
import jax
import jax.numpy as jnp
from jax.experimental import pallas as pl
from jax.experimental.pallas import tpu as pltpu


def _round_up(x, m):
    return (x + m - 1) // m * m


def _vmem_cap_bytes():
    """Generation-aware scoped-VMEM budget: ~85% of physical per-core VMEM
    (~54 MiB on v7x's 64 MiB, ~108 MiB on v5e/v6e's 128 MiB), leaving headroom
    for compiler-internal scratch and semaphores."""
    cap = 64 * 1024 * 1024  # conservative fallback (safe on every generation)
    try:
        info = pltpu.get_tpu_info()
        cap = int(getattr(info, "vmem_capacity_bytes", cap))
    except Exception:
        pass
    return int(cap * 0.85)


def _pick_tile_m(m):
    """Row-tile size: >= 2 blocks along the parallel M axis when M permits
    (v7x has 2 TensorCores), and big enough to amortize per-step overhead."""
    if m >= 1024:
        return 512
    if m >= 512:
        return 256
    if m >= 256:
        return 128
    if m >= 16:
        # Split small M into two sublane-aligned blocks so both TCs get work.
        return _round_up((m + 1) // 2, 8)
    return m  # tiny M: single full-extent block (always legal)


# ---------------------------------------------------------------------------
# Fused multi-layer stage kernel
# ---------------------------------------------------------------------------
def _make_stage_kernel(weights_resident):
    """Grid = (M_tiles, L).

    The (tm, H) activation stays resident in a bf16 VMEM scratch across the
    layer axis.  If `weights_resident`, the full (L, H, H) weight stack (and
    (L, 1, H) bias stack) sit in VMEM and are indexed per layer; otherwise one
    (H, H) block is streamed per layer step.  The output tile is only written
    on the last layer.
    """

    def kernel(relu_ref, x_ref, w_ref, b_ref, o_ref, act_ref):
        l = pl.program_id(1)
        n_layers = pl.num_programs(1)

        @pl.when(l == 0)
        def _():
            act_ref[...] = x_ref[...].astype(act_ref.dtype)

        if weights_resident:
            w = w_ref[l]          # (H, H) from the resident (L, H, H) stack
            b = b_ref[l]          # (1, H)
        else:
            w = w_ref[0]          # streamed (1, H, H) block for layer l
            b = b_ref[0]

        # MXU matmul in bf16 with an f32 accumulator.
        h = jnp.dot(act_ref[...], w, preferred_element_type=jnp.float32)
        h = h + b.astype(jnp.float32)

        # Per-layer optional ReLU: floor is 0.0 when the flag is set, -inf
        # otherwise (scalar select + broadcast max).
        relu_floor = jnp.where(relu_ref[l] != 0, 0.0, -jnp.inf)
        h = jnp.maximum(h, relu_floor)

        @pl.when(l != n_layers - 1)
        def _():
            act_ref[...] = h.astype(act_ref.dtype)

        @pl.when(l == n_layers - 1)
        def _():
            o_ref[...] = h.astype(o_ref.dtype)

    return kernel


def pallas_pipeline_stage(x2d, w_stack, b_stack, relu_flags, *,
                          out_dtype=None, tm=None):
    """y = stage(x): apply L fused Linear(+optional ReLU) layers in order.

    x2d:        (M, H)   any float dtype (cast to the weight dtype in-kernel)
    w_stack:    (L, H, H) stored (in, out) so y = x @ W + b
    b_stack:    (L, 1, H) float32
    relu_flags: (L,) int32, 1 => ReLU after that layer
    """
    M, H = x2d.shape
    L, h_in, h_out = w_stack.shape
    assert h_in == H and h_out == H, (
        "fused stage keeps the activation resident in VMEM; layers must be H->H")
    assert b_stack.shape == (L, 1, H)
    assert relu_flags.shape == (L,)

    out_dtype = out_dtype or x2d.dtype
    compute_dtype = w_stack.dtype

    if tm is None:
        tm = _pick_tile_m(M)
    n_m_tiles = pl.cdiv(M, tm)
    grid = (n_m_tiles, L)

    x_isz = jnp.dtype(x2d.dtype).itemsize
    c_isz = jnp.dtype(compute_dtype).itemsize
    o_isz = jnp.dtype(out_dtype).itemsize

    vmem_cap = _vmem_cap_bytes()

    # Per-tile VMEM: double-buffered x / out tiles + bf16 activation scratch.
    tile_bytes = 2 * tm * H * x_isz + 2 * tm * H * o_isz + tm * H * c_isz
    # Weight VMEM (conservatively assume 2 buffers in both modes).
    w_bytes_resident = 2 * L * (H * H * c_isz + H * 4)
    w_bytes_streamed = 2 * (H * H * c_isz + H * 4)

    weights_resident = (tile_bytes + w_bytes_resident) <= vmem_cap
    w_bytes = w_bytes_resident if weights_resident else w_bytes_streamed
    # TODO(synk): if even one double-buffered (H, H) weight block does not fit
    # (very large H, esp. on v7x's 64 MiB VMEM), add an output-N / K reduction
    # grid axis with (H, tn) weight blocks instead of full-K/full-N blocks.

    vmem_limit = int(min(vmem_cap,
                         max(32 * 1024 * 1024, 2 * (tile_bytes + w_bytes))))

    if weights_resident:
        # Whole weight/bias stacks resident in VMEM: constant index_map, so
        # they are DMA'd once and reused by every grid step.
        w_spec = pl.BlockSpec((L, H, H), lambda i, l, flags: (0, 0, 0))
        b_spec = pl.BlockSpec((L, 1, H), lambda i, l, flags: (0, 0, 0))
    else:
        # Stream one layer's weights/bias per grid step.
        w_spec = pl.BlockSpec((1, H, H), lambda i, l, flags: (l, 0, 0))
        b_spec = pl.BlockSpec((1, 1, H), lambda i, l, flags: (l, 0, 0))

    cost = pl.CostEstimate(
        flops=2 * M * H * H * L,
        transcendentals=0,
        bytes_accessed=int(
            M * H * x_isz                                            # x read
            + (1 if weights_resident else n_m_tiles) * L
            * (H * H * c_isz + H * 4)                                # W/b read
            + M * H * o_isz                                          # y write
        ),
    )

    y = pl.pallas_call(
        _make_stage_kernel(weights_resident),
        out_shape=jax.ShapeDtypeStruct((M, H), out_dtype),
        grid_spec=pltpu.PrefetchScalarGridSpec(
            num_scalar_prefetch=1,            # relu_flags -> SMEM
            grid=grid,
            in_specs=[
                pl.BlockSpec((tm, H), lambda i, l, flags: (i, 0)),   # x
                w_spec,                                              # W
                b_spec,                                              # b
            ],
            out_specs=pl.BlockSpec((tm, H), lambda i, l, flags: (i, 0)),
            scratch_shapes=[pltpu.VMEM((tm, H), compute_dtype)],
        ),
        compiler_params=pltpu.CompilerParams(
            dimension_semantics=("parallel", "arbitrary"),
            vmem_limit_bytes=vmem_limit,
        ),
        cost_estimate=cost,
    )(relu_flags, x2d, w_stack, b_stack)

    return y


# ---------------------------------------------------------------------------
# PipelineStage: holds a list of layers, forward applies them sequentially
# ---------------------------------------------------------------------------
class PipelineStage:
    """JAX/Pallas equivalent of the PyTorch PipelineStage container.

    `layers` is a list of (w, b, apply_relu) tuples (Linear(H, H) layers).
    forward(x) applies them in order, exactly like the reference
    `for layer in self.layers: x = layer(x)`, but fused into one Pallas kernel
    so the activation never leaves VMEM between layers.
    """

    def __init__(self, layers, stage_id: int):
        self.layers = layers
        self.stage_id = stage_id
        self.is_first_stage = stage_id == 0
        self.is_last_stage = False

        # Pre-stack parameters for the fused stage kernel.  Weights and
        # activations run through the MXU in bf16; biases + accumulation stay
        # f32.
        # TODO(synk): on v7x, optionally store weights in fp8 (keep bf16
        # activations / f32 accumulation) when weight-bandwidth-bound.
        self.w_stack = jnp.stack([w for (w, _, _) in layers]).astype(jnp.bfloat16)
        hidden = self.w_stack.shape[-1]
        self.b_stack = jnp.stack([b for (_, b, _) in layers]).reshape(
            len(layers), 1, hidden).astype(jnp.float32)
        self.relu_flags = jnp.array(
            [1 if r else 0 for (_, _, r) in layers], dtype=jnp.int32)

    def forward(self, x):
        """Forward pass through stage layers (fused Pallas kernel)."""
        lead = x.shape[:-1]
        x2d = x.reshape(-1, x.shape[-1])
        y2d = pallas_pipeline_stage(
            x2d, self.w_stack, self.b_stack, self.relu_flags,
            out_dtype=x.dtype)
        return y2d.reshape(*lead, self.w_stack.shape[-1])

    def __call__(self, x):
        return self.forward(x)


# ---------------------------------------------------------------------------
# Deterministic parameter construction + demo
# ---------------------------------------------------------------------------
def make_stage(key, hidden: int, num_layers: int, stage_id: int) -> PipelineStage:
    layers = []
    for li in range(num_layers):
        key, kw, kb = jax.random.split(key, 3)
        # nn.Linear-style init (uniform in +-1/sqrt(fan_in)); stored as (in, out).
        bound = 1.0 / jnp.sqrt(hidden)
        w = jax.random.uniform(
            kw, (hidden, hidden), jnp.float32, minval=-bound, maxval=bound)
        b = jax.random.uniform(
            kb, (hidden,), jnp.float32, minval=-bound, maxval=bound)
        apply_relu = li < num_layers - 1  # ReLU between layers, none on the last
        layers.append((w, b, apply_relu))
    return PipelineStage(layers, stage_id)


if __name__ == "__main__":
    key = jax.random.PRNGKey(0)

    batch, seq, hidden = 2, 64, 256
    num_layers = 3

    key, kx = jax.random.split(key)
    x = jax.random.normal(kx, (batch, seq, hidden), jnp.float32)

    stage = make_stage(key, hidden, num_layers, stage_id=0)

    y = stage(x)
    jax.block_until_ready(y)
    assert y.shape == (batch, seq, hidden) and y.dtype == x.dtype

    # Pure-JAX reference with matching bf16-matmul / f32-accumulate numerics
    # (intermediate activations are rounded to bf16 at each matmul input,
    # exactly like the bf16 VMEM activation scratch in the kernel).
    ref = x.reshape(-1, hidden).astype(jnp.float32)
    for li in range(num_layers):
        ref = jnp.dot(ref.astype(jnp.bfloat16), stage.w_stack[li],
                      preferred_element_type=jnp.float32)
        ref = ref + stage.b_stack[li][0]
        if bool(stage.relu_flags[li]):
            ref = jnp.maximum(ref, 0.0)
    ref = ref.reshape(batch, seq, hidden)

    assert jnp.allclose(y, ref, atol=1e-2, rtol=1e-2), "mismatch vs reference"
    print("KERNEL_OK")
</pallas_src>

<mosaic_0001>
module attributes {stable_mosaic.version = 11 : i64} {
  func.func @kernel(%arg0: i32, %arg1: i32, %arg2: memref<3xi32, #tpu.memory_space<smem>>, %arg3: memref<64x256xf32, #tpu.memory_space<vmem>>, %arg4: memref<3x256x256xbf16, #tpu.memory_space<vmem>>, %arg5: memref<3x1x256xf32, #tpu.memory_space<vmem>>, %arg6: memref<64x256xf32, #tpu.memory_space<vmem>>, %arg7: memref<64x256xbf16, #tpu.memory_space<vmem>>) attributes {dimension_semantics = [#tpu.dimension_semantics<parallel>, #tpu.dimension_semantics<arbitrary>], iteration_bounds = array<i64: 2, 3>, scalar_prefetch = 1 : i64, scratch_operands = 1 : i64, tpu.core_type = #tpu.core_type<tc>, window_params = [{transform_indices = @transform_0, window_bounds = array<i64: 64, 256>}, {pipeline_mode = #tpu.pipeline_mode<synchronous>, transform_indices = @transform_1, window_bounds = array<i64: 3, 256, 256>}, {pipeline_mode = #tpu.pipeline_mode<synchronous>, transform_indices = @transform_2, window_bounds = array<i64: 3, 1, 256>}, {transform_indices = @transform_3, window_bounds = array<i64: 64, 256>}]} {
    %c0_i32 = arith.constant 0 : i32
    %0 = arith.cmpi eq, %arg1, %c0_i32 : i32
    %1 = arith.extui %0 : i1 to i32
    %c0_i32_0 = arith.constant 0 : i32
    %2 = arith.cmpi ne, %1, %c0_i32_0 : i32
    scf.if %2 {
      %c0_12 = arith.constant 0 : index
      %c0_13 = arith.constant 0 : index
      %25 = vector.load %arg3[%c0_12, %c0_13] : memref<64x256xf32, #tpu.memory_space<vmem>>, vector<64x256xf32>
      %26 = arith.truncf %25 : vector<64x256xf32> to vector<64x256xbf16>
      %c0_14 = arith.constant 0 : index
      %c0_15 = arith.constant 0 : index
      %27 = vector.load %arg7[%c0_14, %c0_15] : memref<64x256xbf16, #tpu.memory_space<vmem>>, vector<64x256xbf16>
      tpu.vector_store %arg7[%c0_14, %c0_15], %26 {strides = array<i32>} : memref<64x256xbf16, #tpu.memory_space<vmem>>, vector<64x256xbf16>,
    } else {
    }
    %3 = arith.index_cast %arg1 : i32 to index
    %c0 = arith.constant 0 : index
    %c0_1 = arith.constant 0 : index
    %4 = vector.load %arg4[%3, %c0, %c0_1] : memref<3x256x256xbf16, #tpu.memory_space<vmem>>, vector<1x256x256xbf16>
    %5 = vector.shape_cast %4 : vector<1x256x256xbf16> to vector<256x256xbf16>
    %6 = arith.index_cast %arg1 : i32 to index
    %c0_2 = arith.constant 0 : index
    %c0_3 = arith.constant 0 : index
    %7 = vector.load %arg5[%6, %c0_2, %c0_3] : memref<3x1x256xf32, #tpu.memory_space<vmem>>, vector<1x1x256xf32>
    %8 = vector.shape_cast %7 : vector<1x1x256xf32> to vector<1x256xf32>
    %c0_4 = arith.constant 0 : index
    %c0_5 = arith.constant 0 : index
    %9 = vector.load %arg7[%c0_4, %c0_5] : memref<64x256xbf16, #tpu.memory_space<vmem>>, vector<64x256xbf16>
    %cst = arith.constant dense<0.000000e+00> : vector<64x256xf32>
    %10 = tpu.matmul %9, %5, %cst {dimension_numbers = #tpu.dot_dimension_numbers<[1], [0], [0], [1], [0, 0, 1, 1], [], []>} : vector<64x256xbf16>, vector<256x256xbf16>, vector<64x256xf32> -> vector<64x256xf32>
    %11 = vector.broadcast %8 : vector<1x256xf32> to vector<64x256xf32>
    %12 = arith.addf %10, %11 : vector<64x256xf32>
    %13 = arith.index_cast %arg1 : i32 to index
    %14 = memref.load %arg2[%13] : memref<3xi32, #tpu.memory_space<smem>>
    %c0_i32_6 = arith.constant 0 : i32
    %15 = arith.cmpi ne, %14, %c0_i32_6 : i32
    %cst_7 = arith.constant 0.000000e+00 : f32
    %cst_8 = arith.constant 0xFF800000 : f32
    %16 = arith.select %15, %cst_7, %cst_8 : f32
    %17 = vector.broadcast %16 : f32 to vector<64x256xf32>
    %18 = arith.maximumf %12, %17 : vector<64x256xf32>
    %c2_i32 = arith.constant 2 : i32
    %19 = arith.cmpi ne, %arg1, %c2_i32 : i32
    %20 = arith.extui %19 : i1 to i32
    %c0_i32_9 = arith.constant 0 : i32
    %21 = arith.cmpi ne, %20, %c0_i32_9 : i32
    scf.if %21 {
      %25 = arith.truncf %18 : vector<64x256xf32> to vector<64x256xbf16>
      %c0_12 = arith.constant 0 : index
      %c0_13 = arith.constant 0 : index
      %26 = vector.load %arg7[%c0_12, %c0_13] : memref<64x256xbf16, #tpu.memory_space<vmem>>, vector<64x256xbf16>
      tpu.vector_store %arg7[%c0_12, %c0_13], %25 {strides = array<i32>} : memref<64x256xbf16, #tpu.memory_space<vmem>>, vector<64x256xbf16>,
    } else {
    }
    %c2_i32_10 = arith.constant 2 : i32
    %22 = arith.cmpi eq, %arg1, %c2_i32_10 : i32
    %23 = arith.extui %22 : i1 to i32
    %c0_i32_11 = arith.constant 0 : i32
    %24 = arith.cmpi ne, %23, %c0_i32_11 : i32
    scf.if %24 {
      %c0_12 = arith.constant 0 : index
      %c0_13 = arith.constant 0 : index
      %25 = vector.load %arg6[%c0_12, %c0_13] : memref<64x256xf32, #tpu.memory_space<vmem>>, vector<64x256xf32>
      tpu.vector_store %arg6[%c0_12, %c0_13], %18 {strides = array<i32>} : memref<64x256xf32, #tpu.memory_space<vmem>>, vector<64x256xf32>,
    } else {
    }
    return
  }
  func.func @transform_0(%arg0: i32, %arg1: i32, %arg2: memref<3xi32, #tpu.memory_space<smem>>) -> (i32, i32) {
    %c0_i32 = arith.constant 0 : i32
    %c0_i32_0 = arith.constant 0 : i32
    return %arg0, %c0_i32 : i32, i32
  }
  func.func @transform_1(%arg0: i32, %arg1: i32, %arg2: memref<3xi32, #tpu.memory_space<smem>>) -> (i32, i32, i32) {
    %c0_i32 = arith.constant 0 : i32
    %c0_i32_0 = arith.constant 0 : i32
    %c0_i32_1 = arith.constant 0 : i32
    %c0_i32_2 = arith.constant 0 : i32
    return %c0_i32, %c0_i32_0, %c0_i32_1 : i32, i32, i32
  }
  func.func @transform_2(%arg0: i32, %arg1: i32, %arg2: memref<3xi32, #tpu.memory_space<smem>>) -> (i32, i32, i32) {
    %c0_i32 = arith.constant 0 : i32
    %c0_i32_0 = arith.constant 0 : i32
    %c0_i32_1 = arith.constant 0 : i32
    %c0_i32_2 = arith.constant 0 : i32
    return %c0_i32, %c0_i32_0, %c0_i32_1 : i32, i32, i32
  }
  func.func @transform_3(%arg0: i32, %arg1: i32, %arg2: memref<3xi32, #tpu.memory_space<smem>>) -> (i32, i32) {
    %c0_i32 = arith.constant 0 : i32
    %c0_i32_0 = arith.constant 0 : i32
    return %arg0, %c0_i32 : i32, i32
  }
}

</mosaic_0001>

<bundles_post_ra>
// kernel: tpu_custom_call.1
= control target key start
LH: loop header
LB: loop body
LE: loop exit
PB: predicated region body
PF: predicated region fallthrough
CT: control target
= control target key end

     0   :  { %s1383_s18 = smov [#allocation4]   ;;  %s1777_s0 = inlined_call_operand.hbm [shape: s32[3], index: 0, kind: input, shape index: {}]   ;;  %s1778_s1 = inlined_call_operand.hbm [shape: f32[128,256], index: 1, kind: input, shape index: {}]   ;;  %s1779_s2 = inlined_call_operand.hbm [shape: bf16[3,256,256], index: 2, kind: input, shape index: {}]   ;;  %s1780_s3 = inlined_call_operand.hbm [shape: f32[3,1,256], index: 3, kind: input, shape index: {}]   ;;  %s1781_s4 = inlined_call_operand.hbm [shape: f32[128,256], index: 4, kind: output, shape index: {}]  }
   0x1   :  { %1783 = sst [smem:[#allocation18_spill]] %s1779_s2  ;;  %s10_s17 = sshll.u32 %s1777_s0, 4  ;;  %s11_s17 = int_to_ptr.hbm [resolvable:$true] %s10_s17 }
   0x2   :  { %1784 = sst [smem:[#allocation19_spill]] %s1780_s3 }
   0x3   :  { %13 = dma.hbm_to_smem %s11_s17, 16, %s1383_s18, [#allocation3] }
   0x4   :  { %1337 = dma.done.wait [#allocation3], 16 }
   0x5   :  { %1338 = vsyncadd [#allocation3], 4294967280 }
   0x6   :  { %16 = sfence }
   0x7   :  { %17 = vsyncpa [#allocation6], 0 }
   0x8   :  { %19 = vsyncpa [#allocation6 + $0x1], 0 }
   0x9   :  { %20 = vsyncpa [#allocation9], 0 }
   0xa   :  { %21 = vsyncpa [#allocation7], 0 }
   0xb   :  { %23 = vsyncpa [#allocation7 + $0x1], 0  ;;  %s1422_s19 = smov 0   ;;  %s1424_s20 = smov 0  }
   0xc   :  { %s1426_s21 = smov 0   ;;  %s1428_s22 = smov 0  }
   0xd   :  { %s1430_s0 = smov 0   ;;  %s1432_s23 = smov 0  }
   0xe   :  { %s1434_s24 = smov 0   ;;  %s1436_s25 = smov 0  }
   0xf LB: > { %1785 = sst [smem:[#allocation16_spill]] %s1373_s23  ;;  %s835_s26 = sadd.s32 4294967295, %s1381_s25   ;;  %s1381_s25 = sphi %s1436_s25, %s29_s25   ;;  %s1377_s24 = sphi %s1434_s24, %s1802_s24   ;;  %s1373_s23 = sphi %s1432_s23, %s1797_s23   ;;  %s1369_s0 = sphi %s1430_s0, %s1801_s0   ;;  %s1365_s22 = sphi %s1428_s22, %s1796_s22   ;;  %s1361_s21 = sphi %s1426_s21, %s1800_s21   ;;  %s1357_s20 = sphi %s1424_s20, %s1799_s20   ;;  %s1353_s19 = sphi %s1422_s19, %s1798_s19  }
  0x10   : > { %s836_s27 = sadd.s32 4294967294, %s1381_s25   ;;  %p61_p0 = scmp.ne.s32.totalorder %s1357_s20, %s1353_s19 }
  0x11   : > { %p1466_p1 = scmp.eq.s32.totalorder %s835_s26, 0  ;;  %p1470_p2 = scmp.eq.s32.totalorder %s835_s26, 5 }
  0x12   : > { %p133_p3 = scmp.eq.s32.totalorder %s836_s27, 5  ;;  %p837_p5 = scmp.ge.s32.totalorder %s1381_s25, 1 }
  0x13   : > { %p1476_p4 = por %p1466_p1, %p61_p0  ;;  %p140_p7 = scmp.lt.s32.totalorder %s1381_s25, 7 }
  0x14   : > { %p1481_p6 = por %p133_p3, %p61_p0  ;;  %s1790_s2 = sld [smem:[#allocation18_spill]] }
  0x15   : > { %p1489_p8 = pnand %p837_p5, %p140_p7  ;;  %s1384_s10 = smov [#allocation8]  }
  0x16   : > { %s153_s11 = sshll.u32 %s1384_s10, 4  ;;  %s1792_s3 = sld [smem:[#allocation19_spill]]  ;;  %s154_s11 = int_to_ptr.vmem [resolvable:$true] %s153_s11 }
  0x17   : > { %p1079_p9 = pneg %p1489_p8  ;;  %s1385_s15 = smov 128  }
  0x18   : > { %s1386_s16 = smov 8   ;;  %s1387_s17 = smov [#allocation10]  }
  0x19   : > { %p1080_p10 = pnand %p1079_p9, %p1466_p1  ;;  %s167_s18 = sshll.u32 %s1387_s17, 4  ;;  %s168_s18 = int_to_ptr.vmem [resolvable:$true] %s167_s18 }
  0x1a   : > { %s151_s8 = sshll.u32 %s1790_s2, 4  ;;  %s1388_s26 = smov 32   ;;  %s152_s8 = int_to_ptr.hbm [resolvable:$true] %s151_s8 }
  0x1b   : > { %1082 = dma.hbm_to_vmem [thread:$0]  (!%p1080_p10), %s152_s8, 12288, %s154_s11, [#allocation9], %s1385_s15, %s1385_s15, %s1386_s16  }
  0x1c   : > { %s165_s14 = sshll.u32 %s1792_s3, 4  ;;  %s1389_s27 = smov 2   ;;  %s166_s14 = int_to_ptr.hbm [resolvable:$true] %s165_s14 }
  0x1d   : > { %1085 = dma.hbm_to_vmem [thread:$0]  (!%p1080_p10), %s166_s14, 96, %s168_s18, [#allocation9], %s1388_s26, %s1388_s26, %s1389_s27  }
  0x1e   : > { %s38_s6 = sadd.s32 1, %s1373_s23  ;;  %s41_s7 = sadd.s32 1, %s1377_s24 }
  0x1f   : > { %p39_p11 = scmp.ge.s32.totalorder %s38_s6, 3  ;;  %s48_s10 = sadd.s32 1, %s1361_s21 }
  0x20   : > { %p55_p12 = scmp.ne.s32.totalorder %s1361_s21, %s1357_s20  ;;  %p56_p13 = scmp.eq.s32.totalorder %s1381_s25, 0 }
  0x21   : > { %s1804_s6 = smov (%p39_p11, %s38_s6), 0  ;;  %s1806_s7 = smov (!%p39_p11, %s41_s7), %s1377_s24 }
  0x22   : > { %1793 = sst [smem:[#allocation17_spill]] %s1804_s6  ;;  %p1509_p0 = por %p56_p13, %p55_p12 }
  0x23   : > { %p1515_p3 = por %p1470_p2, %p55_p12  ;;  %p43_p5 = scmp.ge.s32.totalorder %s1806_s7, 2 }
  0x24   : > { %p1096_p7 = scmp.lt.s32.totalorder %s1381_s25, 6  ;;  %s181_s12 = sand.u32 1, %s1361_s21  }
  0x25   : > { %s1023_s13 = sshll.u32 %s1377_s24, 7  ;;  %s1808_s7 = smov (%p43_p5, %s1806_s7), 0 }
  0x26   : > { %s841_s14 = sshll.u32 %s181_s12, 7  ;;  %s45_s15 = ssub.s32 %s1377_s24, %s1808_s7 }
  0x27   : > { %p46_p9 = scmp.eq.s32.totalorder %s45_s15, 0  ;;  %s191_s29 = scalar_lea.hbm %s1778_s1, %s1023_s13 }
  0x28   : > { %s192_s18 = sshll.u32 %s191_s29, 4  ;;  %s185_s26 = scalar_lea.vmem [#allocation5], %s841_s14  ;;  %s193_s18 = int_to_ptr.hbm [resolvable:$true] %s192_s18 }
  0x29   : > { %s194_s27 = sshll.u32 %s185_s26, 4  ;;  %p1087_p2 = pnand %p1096_p7, %p1509_p0  ;;  %s195_s27 = int_to_ptr.vmem [resolvable:$true] %s194_s27 }
  0x2a   : > { %s1530_s2 = scalar_select %p46_p9, %s1361_s21, %s48_s10  }
  0x2b   : > { %s182_s3 = scalar_lea.sflag [#allocation6], %s181_s12  ;;  %s1390_s6 = smov 256  }
  0x2c   : > { %s1391_s23 = smov 16   ;;  %206 = sbr.rel (%p1489_p8) target bundleno = 349 (0x15d), region = 32 }
  0x2d   : > { %1089 = dma.hbm_to_vmem [thread:$0]  (!%p1087_p2), %s193_s18, 2048, %s195_s27, %s182_s3, %s1390_s6, %s1390_s6, %s1391_s23  }
  0x2e   : > { %s1539_s13 = sand.u32 (!%p1489_p8), 1, %s1357_s20  }
  0x2f   : > { %s846_s10 = sshll.u32 (!%p1489_p8), %s1539_s13, 7  ;;  %s209_s14 = scalar_lea.sflag (!%p1489_p8), [#allocation6], %s1539_s13 }
  0x30   : > { %s1543_s15 = scalar_lea.vmem (!%p1489_p8), [#allocation5], %s846_s10 }
  0x31   : > { %1340 = dma.done.wait (%p1476_p4), %s209_s14, 2048  }
  0x32   : > { %1342 = vsyncadd (%p1476_p4), %s209_s14, 4294965248 }
  0x33   : > { %1344 = dma.done.wait (%p1466_p1), [#allocation9], 12384  }
  0x34   : > { %1346 = vsyncadd (%p1466_p1), [#allocation9], 4294954912  ;;  %s1553_s3 = scalar_lea.vmem [#allocation11], %s846_s10  ;;  %p850_p8 = scmp.ne.s32.totalorder %s1365_s22, 0 }
  0x36   : > { %251 = sbr.rel (%p850_p8) target bundleno = 70 (0x46), region = 48 }
  0x3b   : > { %v252_v0 = vld [vmem:[%s1543_s15] sm:$0xff]  ;;  %v253_v1 = vld [vmem:[%s1543_s15 + $0x8] sm:$0xff]  ;;  %v254_v2 = vld [vmem:[%s1543_s15 + $0x10] sm:$0xff] }
  0x3c   : > { %v268_v3 = vpack.c.bf16 %v253_v1, %v252_v0  ;;  %v255_v4 = vld [vmem:[%s1543_s15 + $0x18] sm:$0xff]  ;;  %v256_v5 = vld [vmem:[%s1543_s15 + $0x20] sm:$0xff]  ;;  %v257_v6 = vld [vmem:[%s1543_s15 + $0x28] sm:$0xff] }
  0x3d   : > { %v269_v7 = vpack.c.bf16 %v255_v4, %v254_v2  ;;  %v270_v8 = vpack.c.bf16 %v257_v6, %v256_v5  ;;  %v258_v9 = vld [vmem:[%s1543_s15 + $0x30] sm:$0xff]  ;;  %v259_v10 = vld [vmem:[%s1543_s15 + $0x38] sm:$0xff]  ;;  %v260_v11 = vld [vmem:[%s1543_s15 + $0x40] sm:$0xff] }
  0x3e   : > { %276 = vst [vmem:[#allocation2] sm:$0xff] %v268_v3  ;;  %v271_v12 = vpack.c.bf16 %v259_v10, %v258_v9  ;;  %v261_v13 = vld [vmem:[%s1543_s15 + $0x48] sm:$0xff]  ;;  %v262_v14 = vld [vmem:[%s1543_s15 + $0x50] sm:$0xff]  ;;  %v263_v15 = vld [vmem:[%s1543_s15 + $0x58] sm:$0xff] }
  0x3f   : > { %277 = vst [vmem:[#allocation2 + $0x8] sm:$0xff] %v269_v7  ;;  %v272_v16 = vpack.c.bf16 %v261_v13, %v260_v11  ;;  %v273_v17 = vpack.c.bf16 %v263_v15, %v262_v14  ;;  %v264_v18 = vld [vmem:[%s1543_s15 + $0x60] sm:$0xff]  ;;  %v265_v19 = vld [vmem:[%s1543_s15 + $0x68] sm:$0xff]  ;;  %v266_v20 = vld [vmem:[%s1543_s15 + $0x70] sm:$0xff] }
  0x40   : > { %278 = vst [vmem:[#allocation2 + $0x10] sm:$0xff] %v270_v8  ;;  %v274_v21 = vpack.c.bf16 %v265_v19, %v264_v18  ;;  %v267_v22 = vld [vmem:[%s1543_s15 + $0x78] sm:$0xff] }
  0x41   : > { %279 = vst [vmem:[#allocation2 + $0x18] sm:$0xff] %v271_v12  ;;  %v275_v23 = vpack.c.bf16 %v267_v22, %v266_v20 }
  0x42   : > { %280 = vst [vmem:[#allocation2 + $0x20] sm:$0xff] %v272_v16 }
  0x43   : > { %281 = vst [vmem:[#allocation2 + $0x28] sm:$0xff] %v273_v17 }
  0x44   : > { %282 = vst [vmem:[#allocation2 + $0x30] sm:$0xff] %v274_v21 }
  0x45   : > { %283 = vst [vmem:[#allocation2 + $0x38] sm:$0xff] %v275_v23 }
  0x46 PF: > { %s1024_s23 = sshll.u32 %s1365_s22, 8  ;;  %s651_s30 = sld [smem:[#allocation4 + %s1365_s22]] }
  0x47   : > { %s1573_s28 = scalar_lea.vmem [#allocation8], %s1024_s23  ;;  %s853_s9 = sshll.u32 %s1365_s22, 1 }
  0x48   : > { %v944_v24 = vld [vmem:[%s1573_s28 + $0x70] sm:$0xf]  ;;  %v1040_v25 = vld [vmem:[%s1573_s28 + $0x74] sm:$0xf0]  ;;  %v1039_v29 = vld [vmem:[%s1573_s28 + $0x74] sm:$0xf] }
  0x49   : > { %v1008_v26 = vld [vmem:[%s1573_s28 + $0xf0] sm:$0xf]  ;;  %v945_v27 = vor.u32 %v1040_v25, %v944_v24  ;;  %v1056_v28 = vld [vmem:[%s1573_s28 + $0xf4] sm:$0xf0]  ;;  %v946_v30 = vld [vmem:[%s1573_s28 + $0x78] sm:$0xf0] }
  0x4a   : > { %v1009_v31 = vor.u32 %v1056_v28, %v1008_v26  ;;  %v949_v32 = vor.u32 %v1039_v29, %v946_v30  ;;  %v1055_v33 = vld [vmem:[%s1573_s28 + $0xf4] sm:$0xf]  ;;  %v1010_v34 = vld [vmem:[%s1573_s28 + $0xf8] sm:$0xf0]  ;;  %v936_v35 = vld [vmem:[%s1573_s28 + $0x60] sm:$0xf] }
  0x4b   : > { %535 = vmatpush.bf16.msra.mxu0 %v945_v27  ;;  %v1013_v36 = vor.u32 %v1055_v33, %v1010_v34  ;;  %v1038_v37 = vld [vmem:[%s1573_s28 + $0x64] sm:$0xf0]  ;;  %v1000_v38 = vld [vmem:[%s1573_s28 + $0xe0] sm:$0xf]  ;;  %v1037_v42 = vld [vmem:[%s1573_s28 + $0x64] sm:$0xf] }
  0x4c   : > { %v1054_v39 = vld [vmem:[%s1573_s28 + $0xe4] sm:$0xf0]  ;;  %564 = vmatpush.bf16.msra.mxu1 %v1009_v31  ;;  %593 = vmatpush.bf16.msra.mxu2 %v949_v32  ;;  %v937_v40 = vor.u32 %v1038_v37, %v936_v35  ;;  %v938_v43 = vld [vmem:[%s1573_s28 + $0x68] sm:$0xf0]  ;;  %v1053_v44 = vld [vmem:[%s1573_s28 + $0xe4] sm:$0xf] }
  0x4d   : > { %v1001_v41 = vor.u32 %v1054_v39, %v1000_v38  ;;  %622 = vmatpush.bf16.msra.mxu3 %v1013_v36  ;;  %v941_v45 = vor.u32 %v1037_v42, %v938_v43  ;;  %v1002_v46 = vld [vmem:[%s1573_s28 + $0xe8] sm:$0xf0]  ;;  %v928_v47 = vld [vmem:[%s1573_s28 + $0x50] sm:$0xf]  ;;  %v1036_v48 = vld [vmem:[%s1573_s28 + $0x54] sm:$0xf0] }
  0x4e   : > { %v1005_v49 = vor.u32 %v1053_v44, %v1002_v46  ;;  %v992_v50 = vld [vmem:[%s1573_s28 + $0xd0] sm:$0xf]  ;;  %v1052_v51 = vld [vmem:[%s1573_s28 + $0xd4] sm:$0xf0]  ;;  %v1035_v52 = vld [vmem:[%s1573_s28 + $0x54] sm:$0xf]  ;;  %v929_v53 = vor.u32 %v1036_v48, %v928_v47 }
  0x4f   : > { %536 = vmatpush.bf16.msra.mxu0 %v937_v40  ;;  %v930_v54 = vld [vmem:[%s1573_s28 + $0x58] sm:$0xf0]  ;;  %v1051_v55 = vld [vmem:[%s1573_s28 + $0xd4] sm:$0xf]  ;;  %v993_v57 = vor.u32 %v1052_v51, %v992_v50  ;;  %v920_v59 = vld [vmem:[%s1573_s28 + $0x40] sm:$0xf] }
  0x50   : > { %v994_v56 = vld [vmem:[%s1573_s28 + $0xd8] sm:$0xf0]  ;;  %565 = vmatpush.bf16.msra.mxu1 %v1001_v41  ;;  %594 = vmatpush.bf16.msra.mxu2 %v941_v45  ;;  %v933_v58 = vor.u32 %v1035_v52, %v930_v54  ;;  %v1034_v60 = vld [vmem:[%s1573_s28 + $0x44] sm:$0xf0]  ;;  %v984_v61 = vld [vmem:[%s1573_s28 + $0xc0] sm:$0xf] }
  0x51   : > { %623 = vmatpush.bf16.msra.mxu3 %v1005_v49  ;;  %v997_v62 = vor.u32 %v1051_v55, %v994_v56  ;;  %v1050_v63 = vld [vmem:[%s1573_s28 + $0xc4] sm:$0xf0]  ;;  %v1033_v0 = vld [vmem:[%s1573_s28 + $0x44] sm:$0xf]  ;;  %v922_v1 = vld [vmem:[%s1573_s28 + $0x48] sm:$0xf0]  ;;  %v921_v4 = vor.u32 %v1034_v60, %v920_v59 }
  0x52   : > { %v1049_v2 = vld [vmem:[%s1573_s28 + $0xc4] sm:$0xf]  ;;  %v986_v3 = vld [vmem:[%s1573_s28 + $0xc8] sm:$0xf0]  ;;  %v985_v5 = vor.u32 %v1050_v63, %v984_v61  ;;  %v925_v6 = vor.u32 %v1033_v0, %v922_v1  ;;  %v912_v7 = vld [vmem:[%s1573_s28 + $0x30] sm:$0xf] }
  0x53   : > { %537 = vmatpush.bf16.msra.mxu0 %v929_v53  ;;  %v1032_v8 = vld [vmem:[%s1573_s28 + $0x34] sm:$0xf0]  ;;  %v976_v9 = vld [vmem:[%s1573_s28 + $0xb0] sm:$0xf]  ;;  %v989_v10 = vor.u32 %v1049_v2, %v986_v3  ;;  %v1031_v12 = vld [vmem:[%s1573_s28 + $0x34] sm:$0xf] }
  0x54   : > { %566 = vmatpush.bf16.msra.mxu1 %v993_v57  ;;  %595 = vmatpush.bf16.msra.mxu2 %v933_v58  ;;  %v1048_v11 = vld [vmem:[%s1573_s28 + $0xb4] sm:$0xf0]  ;;  %v914_v13 = vld [vmem:[%s1573_s28 + $0x38] sm:$0xf0]  ;;  %v1047_v14 = vld [vmem:[%s1573_s28 + $0xb4] sm:$0xf]  ;;  %v913_v16 = vor.u32 %v1032_v8, %v912_v7 }
  0x55   : > { %624 = vmatpush.bf16.msra.mxu3 %v997_v62  ;;  %v978_v15 = vld [vmem:[%s1573_s28 + $0xb8] sm:$0xf0]  ;;  %v977_v17 = vor.u32 %v1048_v11, %v976_v9  ;;  %v917_v18 = vor.u32 %v1031_v12, %v914_v13  ;;  %v904_v19 = vld [vmem:[%s1573_s28 + $0x20] sm:$0xf]  ;;  %v1030_v20 = vld [vmem:[%s1573_s28 + $0x24] sm:$0xf0] }
  0x56   : > { %v968_v21 = vld [vmem:[%s1573_s28 + $0xa0] sm:$0xf]  ;;  %v981_v22 = vor.u32 %v1047_v14, %v978_v15  ;;  %v1046_v23 = vld [vmem:[%s1573_s28 + $0xa4] sm:$0xf0]  ;;  %v1029_v24 = vld [vmem:[%s1573_s28 + $0x24] sm:$0xf]  ;;  %v905_v28 = vor.u32 %v1030_v20, %v904_v19 }
  0x57   : > { %538 = vmatpush.bf16.msra.mxu0 %v921_v4  ;;  %v906_v25 = vld [vmem:[%s1573_s28 + $0x28] sm:$0xf0]  ;;  %v1045_v26 = vld [vmem:[%s1573_s28 + $0xa4] sm:$0xf]  ;;  %v969_v29 = vor.u32 %v1046_v23, %v968_v21  ;;  %v896_v31 = vld [vmem:[%s1573_s28 + $0x10] sm:$0xf] }
  0x58   : > { %567 = vmatpush.bf16.msra.mxu1 %v985_v5  ;;  %596 = vmatpush.bf16.msra.mxu2 %v925_v6  ;;  %v970_v27 = vld [vmem:[%s1573_s28 + $0xa8] sm:$0xf0]  ;;  %v909_v30 = vor.u32 %v1029_v24, %v906_v25  ;;  %v1028_v32 = vld [vmem:[%s1573_s28 + $0x14] sm:$0xf0]  ;;  %v960_v33 = vld [vmem:[%s1573_s28 + $0x90] sm:$0xf] }
  0x59   : > { %625 = vmatpush.bf16.msra.mxu3 %v989_v10  ;;  %v973_v34 = vor.u32 %v1045_v26, %v970_v27  ;;  %v1044_v35 = vld [vmem:[%s1573_s28 + $0x94] sm:$0xf0]  ;;  %v1027_v36 = vld [vmem:[%s1573_s28 + $0x14] sm:$0xf]  ;;  %v898_v37 = vld [vmem:[%s1573_s28 + $0x18] sm:$0xf0]  ;;  %v897_v40 = vor.u32 %v1028_v32, %v896_v31 }
  0x5a   : > { %v1043_v38 = vld [vmem:[%s1573_s28 + $0x94] sm:$0xf]  ;;  %v962_v39 = vld [vmem:[%s1573_s28 + $0x98] sm:$0xf0]  ;;  %v961_v41 = vor.u32 %v1044_v35, %v960_v33  ;;  %v901_v42 = vor.u32 %v1027_v36, %v898_v37  ;;  %v888_v43 = vld [vmem:[%s1573_s28] sm:$0xf] }
  0x5b   : > { %539 = vmatpush.bf16.msra.mxu0 %v913_v16  ;;  %v1026_v44 = vld [vmem:[%s1573_s28 + $0x4] sm:$0xf0]  ;;  %v952_v45 = vld [vmem:[%s1573_s28 + $0x80] sm:$0xf]  ;;  %v965_v46 = vor.u32 %v1043_v38, %v962_v39  ;;  %v1025_v48 = vld [vmem:[%s1573_s28 + $0x4] sm:$0xf] }
  0x5c   : > { %568 = vmatpush.bf16.msra.mxu1 %v977_v17  ;;  %597 = vmatpush.bf16.msra.mxu2 %v917_v18  ;;  %v1042_v47 = vld [vmem:[%s1573_s28 + $0x84] sm:$0xf0]  ;;  %v890_v49 = vld [vmem:[%s1573_s28 + $0x8] sm:$0xf0]  ;;  %v1041_v50 = vld [vmem:[%s1573_s28 + $0x84] sm:$0xf]  ;;  %v889_v52 = vor.u32 %v1026_v44, %v888_v43 }
  0x5d   : > { %626 = vmatpush.bf16.msra.mxu3 %v981_v22  ;;  %v954_v51 = vld [vmem:[%s1573_s28 + $0x88] sm:$0xf0]  ;;  %v856_v53 = vld [vmem:[#allocation2] sm:$0xf]  ;;  %v1058_v54 = vld [vmem:[#allocation2 + $0x4] sm:$0xf0]  ;;  %v953_v55 = vor.u32 %v1042_v47, %v952_v45  ;;  %v893_v56 = vor.u32 %v1025_v48, %v890_v49 }
  0x5e   : > { %v1057_v57 = vld [vmem:[#allocation2 + $0x4] sm:$0xf]  ;;  %v858_v58 = vld [vmem:[#allocation2 + $0x8] sm:$0xf0]  ;;  %v957_v59 = vor.u32 %v1041_v50, %v954_v51  ;;  %v857_v60 = vor.u32 %v1058_v54, %v856_v53  ;;  %v864_v62 = vld [vmem:[#allocation2 + $0x10] sm:$0xf] }
  0x5f   : > { %540 = vmatpush.bf16.msra.mxu0 %v905_v28  ;;  %v861_v61 = vor.u32 %v1057_v57, %v858_v58  ;;  %v1060_v63 = vld [vmem:[#allocation2 + $0x14] sm:$0xf0]  ;;  %v1059_v0 = vld [vmem:[#allocation2 + $0x14] sm:$0xf]  ;;  %v866_v1 = vld [vmem:[#allocation2 + $0x18] sm:$0xf0] }
  0x60   : > { %569 = vmatpush.bf16.msra.mxu1 %v969_v29  ;;  %598 = vmatpush.bf16.msra.mxu2 %v909_v30  ;;  %v865_v2 = vor.u32 %v1060_v63, %v864_v62  ;;  %v869_v3 = vor.u32 %v1059_v0, %v866_v1  ;;  %v872_v4 = vld [vmem:[#allocation2 + $0x20] sm:$0xf]  ;;  %v1062_v5 = vld [vmem:[#allocation2 + $0x24] sm:$0xf0]  ;;  %v1061_v6 = vld [vmem:[#allocation2 + $0x24] sm:$0xf] }
  0x61   : > { %627 = vmatpush.bf16.msra.mxu3 %v973_v34  ;;  %v874_v7 = vld [vmem:[#allocation2 + $0x28] sm:$0xf0]  ;;  %v873_v8 = vor.u32 %v1062_v5, %v872_v4  ;;  %v880_v10 = vld [vmem:[#allocation2 + $0x30] sm:$0xf]  ;;  %v1064_v11 = vld [vmem:[#allocation2 + $0x34] sm:$0xf0] }
  0x62   : > { %v877_v9 = vor.u32 %v1061_v6, %v874_v7  ;;  %v1063_v12 = vld [vmem:[#allocation2 + $0x34] sm:$0xf]  ;;  %v882_v13 = vld [vmem:[#allocation2 + $0x38] sm:$0xf0]  ;;  %v881_v14 = vor.u32 %v1064_v11, %v880_v10  ;;  %s320_s6 = scalar_lea.vmem [#allocation10], %s853_s9  ;;  %p652_p1 = scmp.ne.s32.totalorder %s651_s30, 0 }
  0x63   : > { %541 = vmatpush.bf16.msra.mxu0 %v897_v40  ;;  %v885_v15 = vor.u32 %v1063_v12, %v882_v13  ;;  %v321_v16 = vld [vmem:[%s320_s6] sm:$0x3]  ;;  %p1014_p4 = scmp.eq.s32.totalorder %s1365_s22, 2 }
  0x64   : > { %570 = vmatpush.bf16.msra.mxu1 %v961_v41  ;;  %599 = vmatpush.bf16.msra.mxu2 %v901_v42  ;;  %v1641_v17 = vperm.slane %v321_v16, 0  ;;  %s653_s8 = scalar_select %p652_p1, 0.0, -inf  ;;  %v1646_v23 = vperm.slane %v321_v16, 1 }
  0x65   : > { %628 = vmatpush.bf16.msra.mxu3 %v965_v46 }
  0x66   : > { %v1644_v21 = vstv %s653_s8 }
  0x67   : > { %542 = vmatpush.bf16.msra.mxu0 %v889_v52 }
  0x68   : > { %571 = vmatpush.bf16.msra.mxu1 %v953_v55  ;;  %600 = vmatpush.bf16.msra.mxu2 %v893_v56 }
  0x69   : > { %629 = vmatpush.bf16.msra.mxu3 %v957_v59 }
  0x6a   : > { %543 = vmatmul.bf16.vlgmr.msra.gmra.mxu0 %v857_v60 }
  0x6b   : > { %572 = vmatmul.bf16.vlgmr.msra.gmra.mxu1 %v861_v61  ;;  %601 = vmatmul.bf16.vlgmr.msra.gmra.mxu2 %v857_v60 }
  0x6c   : > { %630 = vmatmul.bf16.vlgmr.msra.gmra.mxu3 %v861_v61 }
  0x7a   : > { %548 = vmatmul.bf16.gmra.mxu0 %v865_v2 }
  0x7b   : > { %577 = vmatmul.bf16.gmra.mxu1 %v869_v3  ;;  %606 = vmatmul.bf16.gmra.mxu2 %v865_v2 }
  0x7c   : > { %635 = vmatmul.bf16.gmra.mxu3 %v869_v3 }
  0x8a   : > { %553 = vmatmul.bf16.gmra.mxu0 %v873_v8 }
  0x8b   : > { %582 = vmatmul.bf16.gmra.mxu1 %v877_v9  ;;  %611 = vmatmul.bf16.gmra.mxu2 %v873_v8 }
  0x8c   : > { %640 = vmatmul.bf16.gmra.mxu3 %v877_v9 }
  0x9a   : > { %558 = vmatmul.bf16.gmra.mxu0 %v881_v14 }
  0x9b   : > { %587 = vmatmul.bf16.gmra.mxu1 %v885_v15  ;;  %616 = vmatmul.bf16.gmra.mxu2 %v881_v14 }
  0x9c   : > { %645 = vmatmul.bf16.gmra.mxu3 %v885_v15 }
  0xe7   : > { %v544_v18 = vpop.f32.mrf.mxu0 }
  0xe8   : > { %v545_v19 = vadd.f32 %v544_v18, %v1641_v17  ;;  %v573_v20 = vpop.f32.mrf.mxu1 }
  0xea   : > { %v574_v22 = vadd.f32 %v573_v20, %v545_v19 }
  0xec   : > { %v1649_v24 = vmax.f32 %v574_v22, %v1644_v21 }
  0xee   : > { %v602_v25 = vpop.f32.mrf.mxu2 }
  0xef   : > { %v603_v26 = vadd.f32 %v602_v25, %v1646_v23  ;;  %v631_v27 = vpop.f32.mrf.mxu3  ;;  %v546_v28 = vpop.f32.mrf.mxu0 }
  0xf0   : > { %v547_v29 = vadd.f32 %v546_v28, %v1641_v17  ;;  %v575_v30 = vpop.f32.mrf.mxu1 }
  0xf1   : > { %v632_v31 = vadd.f32 %v631_v27, %v603_v26 }
  0xf2   : > { %v576_v32 = vadd.f32 %v575_v30, %v547_v29 }
  0xf3   : > { %v1654_v33 = vmax.f32 %v632_v31, %v1644_v21 }
  0xf4   : > { %v1657_v34 = vmax.f32 %v576_v32, %v1644_v21 }
  0xf6   : > { %v604_v35 = vpop.f32.mrf.mxu2 }
  0xf7   : > { %v605_v36 = vadd.f32 %v604_v35, %v1646_v23  ;;  %v633_v37 = vpop.f32.mrf.mxu3  ;;  %v549_v38 = vpop.f32.mrf.mxu0 }
  0xf8   : > { %v550_v39 = vadd.f32 %v549_v38, %v1641_v17  ;;  %v578_v40 = vpop.f32.mrf.mxu1 }
  0xf9   : > { %v634_v41 = vadd.f32 %v633_v37, %v605_v36 }
  0xfa   : > { %v579_v42 = vadd.f32 %v578_v40, %v550_v39 }
  0xfb   : > { %v1662_v43 = vmax.f32 %v634_v41, %v1644_v21 }
  0xfc   : > { %v1665_v44 = vmax.f32 %v579_v42, %v1644_v21 }
  0xfe   : > { %v607_v45 = vpop.f32.mrf.mxu2 }
  0xff   : > { %v608_v46 = vadd.f32 %v607_v45, %v1646_v23  ;;  %v636_v47 = vpop.f32.mrf.mxu3  ;;  %v551_v48 = vpop.f32.mrf.mxu0 }
 0x100   : > { %v552_v49 = vadd.f32 %v551_v48, %v1641_v17  ;;  %v580_v50 = vpop.f32.mrf.mxu1 }
 0x101   : > { %v637_v51 = vadd.f32 %v636_v47, %v608_v46 }
 0x102   : > { %v581_v52 = vadd.f32 %v580_v50, %v552_v49 }
 0x103   : > { %v1670_v53 = vmax.f32 %v637_v51, %v1644_v21 }
 0x104   : > { %v1673_v54 = vmax.f32 %v581_v52, %v1644_v21 }
 0x106   : > { %v609_v55 = vpop.f32.mrf.mxu2 }
 0x107   : > { %v610_v56 = vadd.f32 %v609_v55, %v1646_v23  ;;  %v638_v57 = vpop.f32.mrf.mxu3  ;;  %v554_v58 = vpop.f32.mrf.mxu0 }
 0x108   : > { %v555_v59 = vadd.f32 %v554_v58, %v1641_v17  ;;  %v583_v60 = vpop.f32.mrf.mxu1 }
 0x109   : > { %v639_v61 = vadd.f32 %v638_v57, %v610_v56 }
 0x10a   : > { %v584_v62 = vadd.f32 %v583_v60, %v555_v59 }
 0x10b   : > { %v1678_v63 = vmax.f32 %v639_v61, %v1644_v21 }
 0x10c   : > { %v1681_v0 = vmax.f32 %v584_v62, %v1644_v21 }
 0x10e   : > { %v612_v1 = vpop.f32.mrf.mxu2 }
 0x10f   : > { %v613_v2 = vadd.f32 %v612_v1, %v1646_v23  ;;  %v641_v3 = vpop.f32.mrf.mxu3  ;;  %v556_v4 = vpop.f32.mrf.mxu0 }
 0x110   : > { %v557_v5 = vadd.f32 %v556_v4, %v1641_v17  ;;  %v585_v6 = vpop.f32.mrf.mxu1 }
 0x111   : > { %v642_v7 = vadd.f32 %v641_v3, %v613_v2 }
 0x112   : > { %v586_v8 = vadd.f32 %v585_v6, %v557_v5 }
 0x113   : > { %v664_v9 = vmax.f32 %v642_v7, %v1644_v21 }
 0x114   : > { %v665_v10 = vmax.f32 %v586_v8, %v1644_v21 }
 0x116   : > { %v614_v11 = vpop.f32.mrf.mxu2 }
 0x117   : > { %v615_v12 = vadd.f32 %v614_v11, %v1646_v23  ;;  %v643_v13 = vpop.f32.mrf.mxu3  ;;  %v559_v14 = vpop.f32.mrf.mxu0 }
 0x118   : > { %v560_v15 = vadd.f32 %v559_v14, %v1641_v17  ;;  %v588_v16 = vpop.f32.mrf.mxu1 }
 0x119   : > { %v644_v18 = vadd.f32 %v643_v13, %v615_v12 }
 0x11a   : > { %v589_v19 = vadd.f32 %v588_v16, %v560_v15 }
 0x11b   : > { %v666_v20 = vmax.f32 %v644_v18, %v1644_v21 }
 0x11c   : > { %v667_v22 = vmax.f32 %v589_v19, %v1644_v21 }
 0x11e   : > { %v617_v25 = vpop.f32.mrf.mxu2 }
 0x11f   : > { %v618_v26 = vadd.f32 %v617_v25, %v1646_v23  ;;  %v646_v27 = vpop.f32.mrf.mxu3  ;;  %v561_v28 = vpop.f32.mrf.mxu0 }
 0x120   : > { %v562_v29 = vadd.f32 %v561_v28, %v1641_v17  ;;  %v590_v31 = vpop.f32.mrf.mxu1 }
 0x121   : > { %v647_v30 = vadd.f32 %v646_v27, %v618_v26 }
 0x122   : > { %v591_v32 = vadd.f32 %v590_v31, %v562_v29 }
 0x123   : > { %v668_v35 = vmax.f32 %v647_v30, %v1644_v21 }
 0x124   : > { %v669_v36 = vmax.f32 %v591_v32, %v1644_v21 }
 0x126   : > { %v619_v37 = vpop.f32.mrf.mxu2 }
 0x127   : > { %v620_v38 = vadd.f32 %v619_v37, %v1646_v23  ;;  %v648_v39 = vpop.f32.mrf.mxu3  ;;  %674 = sbr.rel (%p1014_p4) target bundleno = 310 (0x136), region = 52 }
 0x129   : > { %v649_v40 = vadd.f32 %v648_v39, %v620_v38 }
 0x12b   : > { %v670_v41 = vmax.f32 %v649_v40, %v1644_v21 }
 0x12c   : > { %v675_v17 = vpack.c.bf16 %v1654_v33, %v1649_v24  ;;  %v676_v42 = vpack.c.bf16 %v1662_v43, %v1657_v34  ;;  %v677_v45 = vpack.c.bf16 %v1670_v53, %v1665_v44  ;;  %v678_v46 = vpack.c.bf16 %v1678_v63, %v1673_v54 }
 0x12d   : > { %v679_v23 = vpack.c.bf16 %v664_v9, %v1681_v0  ;;  %v680_v21 = vpack.c.bf16 %v666_v20, %v665_v10  ;;  %v681_v47 = vpack.c.bf16 %v668_v35, %v667_v22  ;;  %v682_v48 = vpack.c.bf16 %v670_v41, %v669_v36 }
 0x12e   : > { %683 = vst [vmem:[#allocation2] sm:$0xff] %v675_v17 }
 0x12f   : > { %684 = vst [vmem:[#allocation2 + $0x8] sm:$0xff] %v676_v42 }
 0x130   : > { %685 = vst [vmem:[#allocation2 + $0x10] sm:$0xff] %v677_v45 }
 0x131   : > { %686 = vst [vmem:[#allocation2 + $0x18] sm:$0xff] %v678_v46 }
 0x132   : > { %687 = vst [vmem:[#allocation2 + $0x20] sm:$0xff] %v679_v23 }
 0x133   : > { %688 = vst [vmem:[#allocation2 + $0x28] sm:$0xff] %v680_v21 }
 0x134   : > { %689 = vst [vmem:[#allocation2 + $0x30] sm:$0xff] %v681_v47 }
 0x135   : > { %690 = vst [vmem:[#allocation2 + $0x38] sm:$0xff] %v682_v48 }
 0x136 PF: > { %p1015_p10 = scmp.ne.s32.totalorder %s1365_s22, 2 }
 0x138   : > { %694 = sbr.rel (%p1015_p10) target bundleno = 333 (0x14d), region = 56 }
 0x13d   : > { %695 = vst [vmem:[%s1553_s3] sm:$0xff] %v1649_v24 }
 0x13e   : > { %696 = vst [vmem:[%s1553_s3 + $0x8] sm:$0xff] %v1654_v33 }
 0x13f   : > { %697 = vst [vmem:[%s1553_s3 + $0x10] sm:$0xff] %v1657_v34 }
 0x140   : > { %698 = vst [vmem:[%s1553_s3 + $0x18] sm:$0xff] %v1662_v43 }
 0x141   : > { %699 = vst [vmem:[%s1553_s3 + $0x20] sm:$0xff] %v1665_v44 }
 0x142   : > { %700 = vst [vmem:[%s1553_s3 + $0x28] sm:$0xff] %v1670_v53 }
 0x143   : > { %701 = vst [vmem:[%s1553_s3 + $0x30] sm:$0xff] %v1673_v54 }
 0x144   : > { %702 = vst [vmem:[%s1553_s3 + $0x38] sm:$0xff] %v1678_v63 }
 0x145   : > { %703 = vst [vmem:[%s1553_s3 + $0x40] sm:$0xff] %v1681_v0 }
 0x146   : > { %704 = vst [vmem:[%s1553_s3 + $0x48] sm:$0xff] %v664_v9 }
 0x147   : > { %705 = vst [vmem:[%s1553_s3 + $0x50] sm:$0xff] %v665_v10 }
 0x148   : > { %706 = vst [vmem:[%s1553_s3 + $0x58] sm:$0xff] %v666_v20 }
 0x149   : > { %707 = vst [vmem:[%s1553_s3 + $0x60] sm:$0xff] %v667_v22 }
 0x14a   : > { %708 = vst [vmem:[%s1553_s3 + $0x68] sm:$0xff] %v668_v35 }
 0x14b   : > { %709 = vst [vmem:[%s1553_s3 + $0x70] sm:$0xff] %v669_v36 }
 0x14c   : > { %710 = vst [vmem:[%s1553_s3 + $0x78] sm:$0xff] %v670_v41 }
 0x14d PF: > { %s1066_s22 = sshll.u32 %s1369_s0, 7  ;;  %s725_s29 = sshll.u32 %s1553_s3, 4  ;;  %s726_s29 = int_to_ptr.vmem [resolvable:$true] %s725_s29 }
 0x14e   : > { %s724_s17 = scalar_lea.hbm %s1781_s4, %s1066_s22  ;;  %s712_s26 = scalar_lea.sflag [#allocation7], %s1539_s13 }
 0x14f   : > { %s727_s18 = sshll.u32 %s724_s17, 4  ;;  %s1297_s0 = scalar_lea.hbm %s1781_s4, 256  ;;  %s728_s18 = int_to_ptr.hbm [resolvable:$true] %s727_s18 }
 0x150   : > { %s1291_s27 = sshra.s32 %s728_s18, 4  ;;  %s1292_s27 = int_to_ptr.hbm [resolvable:$true] %s1291_s27 }
 0x151   : > { %s1293_s10 = scalar_lea.hbm %s1292_s27, 128  ;;  %p1298_p0 = scmp.lt.s32.totalorder %s1292_s27, %s1781_s4 }
 0x152   : > { %p1294_p11 = scmp.ne.s32.totalorder %s1292_s27, %s1293_s10  ;;  %p1299_p5 = scmp.lt.s32.totalorder %s1297_s0, %s1293_s10 }
 0x154   : > { %p1295_p12 = pnand %p1294_p11, %p1515_p3  ;;  %p1300_p7 = por %p1299_p5, %p1298_p0 }
 0x156   : > { %p1296_p13 = pneg %p1295_p12 }
 0x158   : > { %p1301_p9 = pnand %p1300_p7, %p1296_p13 }
 0x15a   : > { %1304 = shalt.err (!%p1301_p9)
}
 0x15b   : > { %s1392_s13 = smov 256   ;;  %s1393_s3 = smov 16  }
 0x15c   : > { %1077 = dma.vmem_to_hbm [thread:$0]  (%p1515_p3), %s726_s29, 2048, %s728_s18, %s712_s26, %s1392_s13, %s1392_s13, %s1393_s3  }
 0x15d PF: > { %p1099_p2 = scmp.ge.s32.totalorder %s1381_s25, 2  ;;  %s742_s30 = sand.u32 1, %s1353_s19  }
 0x15e   : > { %s743_s9 = scalar_lea.sflag [#allocation7], %s742_s30 }
 0x15f   : > { %p1091_p8 = pnand %p1099_p2, %p1481_p6 }
 0x161   : > { %p1092_p1 = pneg %p1091_p8 }
 0x163   : > { %1348 = dma.done.wait (%p1092_p1), %s743_s9, 2048  }
 0x164   : > { %1350 = vsyncadd (%p1092_p1), %s743_s9, 4294965248  ;;  %s29_s25 = sadd.s32 1, %s1381_s25   ;;  %s1796_s22 = sld [smem:[#allocation16_spill]] }
 0x165   : > { %p26_p4 = scmp.ge.s32.totalorder %s29_s25, 8   ;;  %s1797_s23 = sld [smem:[#allocation17_spill]] }
 0x166   : > { %s1798_s19 = smov %s1357_s20  ;;  %s1799_s20 = smov %s1361_s21 }
 0x167   : > { %s1800_s21 = smov %s1530_s2  ;;  %s1801_s0 = smov %s1377_s24 }
 0x168   : > { %s1802_s24 = smov %s1808_s7  ;;  %28 = sbr.rel (!%p26_p4) target bundleno = 15 (0xf), region = 99 }
 0x16d   :  { %749 = vsyncpa [#allocation6], 1 }
 0x16e   :  { %751 = vsyncpa [#allocation6 + $0x1], 1 }
 0x16f   :  { %752 = vsyncpa [#allocation9], 1 }
 0x170   :  { %753 = vsyncpa [#allocation7], 1 }
 0x171   :  { %755 = vsyncpa [#allocation7 + $0x1], 1 }

</bundles_post_ra>
